<compile_context>
chip_gen: v7x
topology: tpu7x:2x2x1
jax: 0.10.0
libtpu: 0.0.40
codegen_flags: <defaults>
</compile_context>

<pallas_src>
import jax
import jax.numpy as jnp
from jax import lax
from jax.experimental import pallas as pl
from jax.experimental.pallas import tpu as pltpu

EPS = 1e-5                      # nn.BatchNorm2d default eps
COMPUTE_DTYPE = jnp.bfloat16    # MXU operand dtype (accumulation is f32)


# ---------------------------------------------------------------------------
# Fused Pallas kernel: conv1 -> BN -> ReLU -> conv2 -> BN -> ReLU
# ---------------------------------------------------------------------------
def _make_doubleconv_kernel(H, Cout, count):
    """Returns the fused kernel specialized to static H / Cout / N*H*W."""
    inv_count = 1.0 / float(count)

    def kernel(x_ref, b1_ref, b2_ref, params_ref, out_ref):
        # x_ref      : (N*H, W*Cin)        f32  row-flattened NHWC input
        # b1_ref     : (3*W*Cin,  W*Cout)  bf16 K-stacked banded conv1 weights
        # b2_ref     : (3*W*Cout, W*Cout)  bf16 K-stacked banded conv2 weights
        # params_ref : (2, W*Cout)         f32  row0 = gamma, row1 = beta (W-tiled)
        # out_ref    : (N*H, W*Cout)       f32  lane-dense output slab
        gamma = params_ref[0:1, :]
        beta = params_ref[1:2, :]
        NH = x_ref.shape[0]
        Wout = out_ref.shape[1]
        W = Wout // Cout

        def shifted_cat(x32):
            # (NH, K) f32 -> (NH, 3K) bf16 = [row i-1 | row i | row i+1],
            # with zero rows at the per-image H boundaries.  pltpu.roll
            # follows jnp.roll semantics: roll(x, 1, axis=0)[i] == x[i-1];
            # the circular wrap (including across stacked images) lands only
            # on rows the iota mask zeroes out.
            K = x32.shape[1]
            h = lax.broadcasted_iota(jnp.int32, (NH, K), 0) % H
            up = jnp.where(h == 0, 0.0, pltpu.roll(x32, 1, axis=0))        # x[i-1]
            dn = jnp.where(h == H - 1, 0.0, pltpu.roll(x32, NH - 1, axis=0))  # x[i+1]
            return jnp.concatenate([up, x32, dn], axis=1).astype(COMPUTE_DTYPE)

        def conv3x3(x32, band_ref):
            # Single MXU matmul per conv; dx taps and W zero-padding are
            # folded into the banded weights, dy handled by shifted_cat.
            return jnp.dot(shifted_cat(x32), band_ref[...],
                           preferred_element_type=jnp.float32)

        def bn_relu(y):
            # Stack sum / sum-of-squares into one (2, Wout) row pair, then
            # reduce over the W lane groups with XLU lane rolls (exact f32).
            stats = jnp.concatenate(
                [jnp.sum(y, axis=0, keepdims=True),
                 jnp.sum(y * y, axis=0, keepdims=True)], axis=0)
            if (W & (W - 1)) == 0:                      # power-of-two W: tree
                shift = Cout
                while shift < Wout:
                    stats = stats + pltpu.roll(stats, shift, axis=1)
                    shift *= 2
            else:                                       # generic fallback
                acc = stats
                for g in range(1, W):
                    acc = acc + pltpu.roll(stats, g * Cout, axis=1)
                stats = acc
            mean = stats[0:1, :] * inv_count
            var = stats[1:2, :] * inv_count - mean * mean   # biased batch var
            scale = gamma * lax.rsqrt(var + EPS)            # rsqrt on the EUP
            offset = beta - mean * scale                    # fused scale/shift
            return jnp.maximum(y * scale + offset, 0.0)

        a1 = bn_relu(conv3x3(x_ref[...], b1_ref))
        out_ref[...] = bn_relu(conv3x3(a1, b2_ref))

    return kernel


# ---------------------------------------------------------------------------
# Host-side helpers (tiny, run once per call under jit)
# ---------------------------------------------------------------------------
def _banded_conv_weights(w, W):
    """HWIO (3,3,Cin,Cout) -> (3*W*Cin, W*Cout) K-stacked banded matrices.

    band[ky*W*Cin + wi*Cin + ci, wo*Cout + co] = w[ky, dx, ci, co] with
    wi == wo + dx - 1 (out-of-range dx taps dropped == 'same' zero padding
    along W).  Rows are ordered ky-major to match the in-kernel lane concat
    [row i-1 | row i | row i+1].
    """
    _, _, Cin, Cout = w.shape
    wo = jnp.arange(W)
    shift = jnp.stack([(wo[:, None] == wo[None, :] + dx - 1) for dx in range(3)])
    shift = shift.astype(w.dtype)
    band = jnp.einsum('xab,yxio->yaibo', shift, w)   # (3, W, Cin, W, Cout)
    return band.reshape(3 * W * Cin, W * Cout)


# ---------------------------------------------------------------------------
# Wrapper (NCHW in / NCHW out, matching the PyTorch module interface)
# ---------------------------------------------------------------------------
@jax.jit
def double_conv(x_nchw, w1, b1, w2, b2, gamma, beta):
    # Conv biases are accepted for interface parity but are mathematically
    # cancelled by the subsequent batch-statistics BatchNorm (mean subtraction
    # removes any per-channel constant; variance is unchanged).
    del b1, b2

    N, Cin, H, W = x_nchw.shape
    Cout = w1.shape[-1]
    NH, Wout = N * H, W * Cout

    # NCHW -> NHWC -> lane-flattened rows (f32 so the in-kernel sublane rolls
    # stay on the plain f32 path; the bf16 cast for the MXU happens in-kernel).
    x_rows = (jnp.transpose(x_nchw, (0, 2, 3, 1))
              .reshape(NH, W * Cin)
              .astype(jnp.float32))

    band1 = _banded_conv_weights(w1, W).astype(COMPUTE_DTYPE)  # (3*W*Cin,  Wout)
    band2 = _banded_conv_weights(w2, W).astype(COMPUTE_DTYPE)  # (3*W*Cout, Wout)

    # gamma / beta tiled along W and packed into one (2, Wout) input.
    params = jnp.stack([jnp.tile(gamma.astype(jnp.float32), W),
                        jnp.tile(beta.astype(jnp.float32), W)], axis=0)

    kernel = _make_doubleconv_kernel(H=H, Cout=Cout, count=N * H * W)
    vmem = pl.BlockSpec(memory_space=pltpu.MemorySpace.VMEM)

    out2d = pl.pallas_call(
        kernel,
        out_shape=jax.ShapeDtypeStruct((NH, Wout), jnp.float32),
        in_specs=[vmem, vmem, vmem, vmem],
        out_specs=vmem,
    )(x_rows, band1, band2, params)

    # (N*H, W*Cout) -> (N, H, W, Cout) -> NCHW.
    return jnp.transpose(out2d.reshape(N, H, W, Cout), (0, 3, 1, 2))


# ---------------------------------------------------------------------------
# Pure-JAX reference with matching MXU operand precision (bf16 in, f32 acc)
# ---------------------------------------------------------------------------
def _reference(x_nchw, w1, b1, w2, b2, gamma, beta, compute_dtype=COMPUTE_DTYPE):
    x = jnp.transpose(x_nchw, (0, 2, 3, 1))
    dn = ("NHWC", "HWIO", "NHWC")

    def conv(a, w, b):
        y = lax.conv_general_dilated(
            a.astype(compute_dtype), w.astype(compute_dtype), (1, 1), "SAME",
            dimension_numbers=dn, preferred_element_type=jnp.float32)
        return y + b.reshape(1, 1, 1, -1).astype(jnp.float32)

    def bn_relu(y):
        m = jnp.mean(y, axis=(0, 1, 2), keepdims=True)
        v = jnp.mean((y - m) ** 2, axis=(0, 1, 2), keepdims=True)
        yn = (y - m) * lax.rsqrt(v + EPS)
        return jnp.maximum(yn * gamma.reshape(1, 1, 1, -1)
                           + beta.reshape(1, 1, 1, -1), 0.0)

    y = bn_relu(conv(x, w1, b1))
    y = bn_relu(conv(y, w2, b2))
    return jnp.transpose(y, (0, 3, 1, 2))


if __name__ == "__main__":
    # DoubleConv(In=4, Out=8) on a small NCHW input; W*Cout = 128 (lane-dense).
    N, Cin, Cout, H, W = 2, 4, 8, 16, 16

    key = jax.random.PRNGKey(0)
    kx, k1, kb1, k2, kb2, kg, kb = jax.random.split(key, 7)

    x = jax.random.normal(kx, (N, Cin, H, W), jnp.float32)
    w1 = jax.random.normal(k1, (3, 3, Cin, Cout), jnp.float32) * 0.1
    b1 = jax.random.normal(kb1, (Cout,), jnp.float32) * 0.1
    w2 = jax.random.normal(k2, (3, 3, Cout, Cout), jnp.float32) * 0.1
    b2 = jax.random.normal(kb2, (Cout,), jnp.float32) * 0.1
    gamma = 1.0 + 0.1 * jax.random.normal(kg, (Cout,), jnp.float32)
    beta = 0.1 * jax.random.normal(kb, (Cout,), jnp.float32)

    out = jax.block_until_ready(double_conv(x, w1, b1, w2, b2, gamma, beta))
    ref = _reference(x, w1, b1, w2, b2, gamma, beta)

    assert out.shape == (N, Cout, H, W)
    # bf16 MXU operands (f32 accumulation, f32 BN stats) -> ~1e-3 level
    # deviations vs the bf16-matched XLA reference; 1e-2 is a safe bound.
    assert bool(jnp.allclose(out, ref, atol=1e-2, rtol=1e-2)), \
        "mismatch vs JAX reference"
    print("KERNEL_OK")
</pallas_src>

<mosaic_0001>
module attributes {stable_mosaic.version = 11 : i64} {
  func.func @kernel(%arg0: memref<32x64xf32, #tpu.memory_space<vmem>>, %arg1: memref<192x128xbf16, #tpu.memory_space<vmem>>, %arg2: memref<384x128xbf16, #tpu.memory_space<vmem>>, %arg3: memref<2x128xf32, #tpu.memory_space<vmem>>, %arg4: memref<32x128xf32, #tpu.memory_space<vmem>>) attributes {dimension_semantics = [], scalar_prefetch = 0 : i64, scratch_operands = 0 : i64, tpu.core_type = #tpu.core_type<tc>} {
    %c0 = arith.constant 0 : index
    %c0_0 = arith.constant 0 : index
    %0 = vector.load %arg3[%c0, %c0_0] : memref<2x128xf32, #tpu.memory_space<vmem>>, vector<1x128xf32>
    %c1 = arith.constant 1 : index
    %c0_1 = arith.constant 0 : index
    %1 = vector.load %arg3[%c1, %c0_1] : memref<2x128xf32, #tpu.memory_space<vmem>>, vector<1x128xf32>
    %c0_2 = arith.constant 0 : index
    %c0_3 = arith.constant 0 : index
    %2 = vector.load %arg0[%c0_2, %c0_3] : memref<32x64xf32, #tpu.memory_space<vmem>>, vector<32x64xf32>
    %3 = tpu.iota {dimensions = array<i32: 0>} : vector<32x64xi32>
    %c16_i32 = arith.constant 16 : i32
    %c0_i32 = arith.constant 0 : i32
    %4 = arith.cmpi eq, %c16_i32, %c0_i32 : i32
    %c1_i32 = arith.constant 1 : i32
    %5 = arith.select %4, %c1_i32, %c16_i32 : i32
    %6 = vector.broadcast %5 : i32 to vector<32x64xi32>
    %7 = arith.remsi %3, %6 : vector<32x64xi32>
    %c0_i32_4 = arith.constant 0 : i32
    %8 = vector.broadcast %c0_i32_4 : i32 to vector<32x64xi32>
    %9 = arith.cmpi ne, %7, %8 : vector<32x64xi32>
    %c0_i32_5 = arith.constant 0 : i32
    %10 = vector.broadcast %c0_i32_5 : i32 to vector<32x64xi32>
    %11 = arith.cmpi slt, %7, %10 : vector<32x64xi32>
    %c0_i32_6 = arith.constant 0 : i32
    %12 = arith.cmpi slt, %5, %c0_i32_6 : i32
    %13 = vector.broadcast %12 : i1 to vector<32x64xi1>
    %14 = vector.broadcast %13 : vector<32x64xi1> to vector<32x64xi1>
    %15 = arith.xori %11, %14 : vector<32x64xi1>
    %16 = arith.andi %15, %9 : vector<32x64xi1>
    %17 = vector.broadcast %5 : i32 to vector<32x64xi32>
    %18 = arith.addi %7, %17 : vector<32x64xi32>
    %19 = arith.select %16, %18, %7 : vector<32x64xi1>, vector<32x64xi32>
    %c0_i32_7 = arith.constant 0 : i32
    %20 = vector.broadcast %c0_i32_7 : i32 to vector<32x64xi32>
    %21 = arith.cmpi eq, %19, %20 : vector<32x64xi32>
    %c1_i32_8 = arith.constant 1 : i32
    %22 = tpu.dynamic_rotate %2 by %c1_i32_8 dim 0 : vector<32x64xf32>, i32 -> vector<32x64xf32>
    %cst = arith.constant 0.000000e+00 : f32
    %23 = vector.broadcast %cst : f32 to vector<32x64xf32>
    %24 = arith.select %21, %23, %22 : vector<32x64xi1>, vector<32x64xf32>
    %c15_i32 = arith.constant 15 : i32
    %25 = vector.broadcast %c15_i32 : i32 to vector<32x64xi32>
    %26 = arith.cmpi eq, %19, %25 : vector<32x64xi32>
    %c31_i32 = arith.constant 31 : i32
    %27 = tpu.dynamic_rotate %2 by %c31_i32 dim 0 : vector<32x64xf32>, i32 -> vector<32x64xf32>
    %cst_9 = arith.constant 0.000000e+00 : f32
    %28 = vector.broadcast %cst_9 : f32 to vector<32x64xf32>
    %29 = arith.select %26, %28, %27 : vector<32x64xi1>, vector<32x64xf32>
    %30 = tpu.concatenate %24, %2, %29 in 1 : vector<32x64xf32>, vector<32x64xf32>, vector<32x64xf32> -> vector<32x192xf32>
    %31 = arith.truncf %30 : vector<32x192xf32> to vector<32x192xbf16>
    %c0_10 = arith.constant 0 : index
    %c0_11 = arith.constant 0 : index
    %32 = vector.load %arg1[%c0_10, %c0_11] : memref<192x128xbf16, #tpu.memory_space<vmem>>, vector<192x128xbf16>
    %cst_12 = arith.constant dense<0.000000e+00> : vector<32x128xf32>
    %33 = tpu.matmul %31, %32, %cst_12 {dimension_numbers = #tpu.dot_dimension_numbers<[1], [0], [0], [1], [0, 0, 1, 1], [], []>} : vector<32x192xbf16>, vector<192x128xbf16>, vector<32x128xf32> -> vector<32x128xf32>
    %cst_13 = arith.constant dense<0.000000e+00> : vector<128xf32>
    %34 = vector.multi_reduction <add>, %33, %cst_13 [0] : vector<32x128xf32> to vector<128xf32>
    %35 = vector.shape_cast %34 : vector<128xf32> to vector<1x128xf32>
    %36 = arith.mulf %33, %33 : vector<32x128xf32>
    %cst_14 = arith.constant dense<0.000000e+00> : vector<128xf32>
    %37 = vector.multi_reduction <add>, %36, %cst_14 [0] : vector<32x128xf32> to vector<128xf32>
    %38 = vector.shape_cast %37 : vector<128xf32> to vector<1x128xf32>
    %39 = tpu.concatenate %35, %38 in 0 : vector<1x128xf32>, vector<1x128xf32> -> vector<2x128xf32>
    %c8_i32 = arith.constant 8 : i32
    %40 = tpu.dynamic_rotate %39 by %c8_i32 dim 1 : vector<2x128xf32>, i32 -> vector<2x128xf32>
    %41 = arith.addf %39, %40 : vector<2x128xf32>
    %c16_i32_15 = arith.constant 16 : i32
    %42 = tpu.dynamic_rotate %41 by %c16_i32_15 dim 1 : vector<2x128xf32>, i32 -> vector<2x128xf32>
    %43 = arith.addf %41, %42 : vector<2x128xf32>
    %c32_i32 = arith.constant 32 : i32
    %44 = tpu.dynamic_rotate %43 by %c32_i32 dim 1 : vector<2x128xf32>, i32 -> vector<2x128xf32>
    %45 = arith.addf %43, %44 : vector<2x128xf32>
    %c64_i32 = arith.constant 64 : i32
    %46 = tpu.dynamic_rotate %45 by %c64_i32 dim 1 : vector<2x128xf32>, i32 -> vector<2x128xf32>
    %47 = arith.addf %45, %46 : vector<2x128xf32>
    %48 = vector.extract_strided_slice %47 {offsets = [0, 0], sizes = [1, 128], strides = [1, 1]} : vector<2x128xf32> to vector<1x128xf32>
    %cst_16 = arith.constant 0.001953125 : f32
    %49 = vector.broadcast %cst_16 : f32 to vector<1x128xf32>
    %50 = arith.mulf %48, %49 : vector<1x128xf32>
    %51 = vector.extract_strided_slice %47 {offsets = [1, 0], sizes = [1, 128], strides = [1, 1]} : vector<2x128xf32> to vector<1x128xf32>
    %cst_17 = arith.constant 0.001953125 : f32
    %52 = vector.broadcast %cst_17 : f32 to vector<1x128xf32>
    %53 = arith.mulf %51, %52 : vector<1x128xf32>
    %54 = arith.mulf %50, %50 : vector<1x128xf32>
    %55 = arith.subf %53, %54 : vector<1x128xf32>
    %cst_18 = arith.constant 9.99999974E-6 : f32
    %56 = vector.broadcast %cst_18 : f32 to vector<1x128xf32>
    %57 = arith.addf %55, %56 : vector<1x128xf32>
    %58 = math.rsqrt %57 : vector<1x128xf32>
    %59 = arith.mulf %0, %58 : vector<1x128xf32>
    %60 = arith.mulf %50, %59 : vector<1x128xf32>
    %61 = arith.subf %1, %60 : vector<1x128xf32>
    %62 = vector.broadcast %59 : vector<1x128xf32> to vector<32x128xf32>
    %63 = arith.mulf %33, %62 : vector<32x128xf32>
    %64 = vector.broadcast %61 : vector<1x128xf32> to vector<32x128xf32>
    %65 = arith.addf %63, %64 : vector<32x128xf32>
    %cst_19 = arith.constant 0.000000e+00 : f32
    %66 = vector.broadcast %cst_19 : f32 to vector<32x128xf32>
    %67 = arith.maximumf %65, %66 : vector<32x128xf32>
    %68 = tpu.iota {dimensions = array<i32: 0>} : vector<32x128xi32>
    %c16_i32_20 = arith.constant 16 : i32
    %c0_i32_21 = arith.constant 0 : i32
    %69 = arith.cmpi eq, %c16_i32_20, %c0_i32_21 : i32
    %c1_i32_22 = arith.constant 1 : i32
    %70 = arith.select %69, %c1_i32_22, %c16_i32_20 : i32
    %71 = vector.broadcast %70 : i32 to vector<32x128xi32>
    %72 = arith.remsi %68, %71 : vector<32x128xi32>
    %c0_i32_23 = arith.constant 0 : i32
    %73 = vector.broadcast %c0_i32_23 : i32 to vector<32x128xi32>
    %74 = arith.cmpi ne, %72, %73 : vector<32x128xi32>
    %c0_i32_24 = arith.constant 0 : i32
    %75 = vector.broadcast %c0_i32_24 : i32 to vector<32x128xi32>
    %76 = arith.cmpi slt, %72, %75 : vector<32x128xi32>
    %c0_i32_25 = arith.constant 0 : i32
    %77 = arith.cmpi slt, %70, %c0_i32_25 : i32
    %78 = vector.broadcast %77 : i1 to vector<32x128xi1>
    %79 = vector.broadcast %78 : vector<32x128xi1> to vector<32x128xi1>
    %80 = arith.xori %76, %79 : vector<32x128xi1>
    %81 = arith.andi %80, %74 : vector<32x128xi1>
    %82 = vector.broadcast %70 : i32 to vector<32x128xi32>
    %83 = arith.addi %72, %82 : vector<32x128xi32>
    %84 = arith.select %81, %83, %72 : vector<32x128xi1>, vector<32x128xi32>
    %c0_i32_26 = arith.constant 0 : i32
    %85 = vector.broadcast %c0_i32_26 : i32 to vector<32x128xi32>
    %86 = arith.cmpi eq, %84, %85 : vector<32x128xi32>
    %c1_i32_27 = arith.constant 1 : i32
    %87 = tpu.dynamic_rotate %67 by %c1_i32_27 dim 0 : vector<32x128xf32>, i32 -> vector<32x128xf32>
    %cst_28 = arith.constant 0.000000e+00 : f32
    %88 = vector.broadcast %cst_28 : f32 to vector<32x128xf32>
    %89 = arith.select %86, %88, %87 : vector<32x128xi1>, vector<32x128xf32>
    %c15_i32_29 = arith.constant 15 : i32
    %90 = vector.broadcast %c15_i32_29 : i32 to vector<32x128xi32>
    %91 = arith.cmpi eq, %84, %90 : vector<32x128xi32>
    %c31_i32_30 = arith.constant 31 : i32
    %92 = tpu.dynamic_rotate %67 by %c31_i32_30 dim 0 : vector<32x128xf32>, i32 -> vector<32x128xf32>
    %cst_31 = arith.constant 0.000000e+00 : f32
    %93 = vector.broadcast %cst_31 : f32 to vector<32x128xf32>
    %94 = arith.select %91, %93, %92 : vector<32x128xi1>, vector<32x128xf32>
    %95 = tpu.concatenate %89, %67, %94 in 1 : vector<32x128xf32>, vector<32x128xf32>, vector<32x128xf32> -> vector<32x384xf32>
    %96 = arith.truncf %95 : vector<32x384xf32> to vector<32x384xbf16>
    %c0_32 = arith.constant 0 : index
    %c0_33 = arith.constant 0 : index
    %97 = vector.load %arg2[%c0_32, %c0_33] : memref<384x128xbf16, #tpu.memory_space<vmem>>, vector<384x128xbf16>
    %cst_34 = arith.constant dense<0.000000e+00> : vector<32x128xf32>
    %98 = tpu.matmul %96, %97, %cst_34 {dimension_numbers = #tpu.dot_dimension_numbers<[1], [0], [0], [1], [0, 0, 1, 1], [], []>} : vector<32x384xbf16>, vector<384x128xbf16>, vector<32x128xf32> -> vector<32x128xf32>
    %cst_35 = arith.constant dense<0.000000e+00> : vector<128xf32>
    %99 = vector.multi_reduction <add>, %98, %cst_35 [0] : vector<32x128xf32> to vector<128xf32>
    %100 = vector.shape_cast %99 : vector<128xf32> to vector<1x128xf32>
    %101 = arith.mulf %98, %98 : vector<32x128xf32>
    %cst_36 = arith.constant dense<0.000000e+00> : vector<128xf32>
    %102 = vector.multi_reduction <add>, %101, %cst_36 [0] : vector<32x128xf32> to vector<128xf32>
    %103 = vector.shape_cast %102 : vector<128xf32> to vector<1x128xf32>
    %104 = tpu.concatenate %100, %103 in 0 : vector<1x128xf32>, vector<1x128xf32> -> vector<2x128xf32>
    %c8_i32_37 = arith.constant 8 : i32
    %105 = tpu.dynamic_rotate %104 by %c8_i32_37 dim 1 : vector<2x128xf32>, i32 -> vector<2x128xf32>
    %106 = arith.addf %104, %105 : vector<2x128xf32>
    %c16_i32_38 = arith.constant 16 : i32
    %107 = tpu.dynamic_rotate %106 by %c16_i32_38 dim 1 : vector<2x128xf32>, i32 -> vector<2x128xf32>
    %108 = arith.addf %106, %107 : vector<2x128xf32>
    %c32_i32_39 = arith.constant 32 : i32
    %109 = tpu.dynamic_rotate %108 by %c32_i32_39 dim 1 : vector<2x128xf32>, i32 -> vector<2x128xf32>
    %110 = arith.addf %108, %109 : vector<2x128xf32>
    %c64_i32_40 = arith.constant 64 : i32
    %111 = tpu.dynamic_rotate %110 by %c64_i32_40 dim 1 : vector<2x128xf32>, i32 -> vector<2x128xf32>
    %112 = arith.addf %110, %111 : vector<2x128xf32>
    %113 = vector.extract_strided_slice %112 {offsets = [0, 0], sizes = [1, 128], strides = [1, 1]} : vector<2x128xf32> to vector<1x128xf32>
    %cst_41 = arith.constant 0.001953125 : f32
    %114 = vector.broadcast %cst_41 : f32 to vector<1x128xf32>
    %115 = arith.mulf %113, %114 : vector<1x128xf32>
    %116 = vector.extract_strided_slice %112 {offsets = [1, 0], sizes = [1, 128], strides = [1, 1]} : vector<2x128xf32> to vector<1x128xf32>
    %cst_42 = arith.constant 0.001953125 : f32
    %117 = vector.broadcast %cst_42 : f32 to vector<1x128xf32>
    %118 = arith.mulf %116, %117 : vector<1x128xf32>
    %119 = arith.mulf %115, %115 : vector<1x128xf32>
    %120 = arith.subf %118, %119 : vector<1x128xf32>
    %cst_43 = arith.constant 9.99999974E-6 : f32
    %121 = vector.broadcast %cst_43 : f32 to vector<1x128xf32>
    %122 = arith.addf %120, %121 : vector<1x128xf32>
    %123 = math.rsqrt %122 : vector<1x128xf32>
    %124 = arith.mulf %0, %123 : vector<1x128xf32>
    %125 = arith.mulf %115, %124 : vector<1x128xf32>
    %126 = arith.subf %1, %125 : vector<1x128xf32>
    %127 = vector.broadcast %124 : vector<1x128xf32> to vector<32x128xf32>
    %128 = arith.mulf %98, %127 : vector<32x128xf32>
    %129 = vector.broadcast %126 : vector<1x128xf32> to vector<32x128xf32>
    %130 = arith.addf %128, %129 : vector<32x128xf32>
    %cst_44 = arith.constant 0.000000e+00 : f32
    %131 = vector.broadcast %cst_44 : f32 to vector<32x128xf32>
    %132 = arith.maximumf %130, %131 : vector<32x128xf32>
    %c0_45 = arith.constant 0 : index
    %c0_46 = arith.constant 0 : index
    %133 = vector.load %arg4[%c0_45, %c0_46] : memref<32x128xf32, #tpu.memory_space<vmem>>, vector<32x128xf32>
    tpu.vector_store %arg4[%c0_45, %c0_46], %132 {strides = array<i32>} : memref<32x128xf32, #tpu.memory_space<vmem>>, vector<32x128xf32>,
    return
  }
}

</mosaic_0001>

<bundles_post_ra>
// kernel: tile.13
= control target key start
LH: loop header
LB: loop body
LE: loop exit
PB: predicated region body
PF: predicated region fallthrough
CT: control target
= control target key end

     0   :  { %s28_s0 = inlined_call_operand.vmem [shape: f32[8], index: 0, kind: input, shape index: {}]   ;;  %s29_s1 = inlined_call_operand.vmem [shape: f32[16,8], index: 1, kind: output, shape index: {}]  }
   0x1   :  { %v4_v0 = vld [vmem:[%s28_s0] ss:$0 sm:$0xff] }
   0x2   :  { %5 = vst [vmem:[%s29_s1] sm:$0xff] %v4_v0  ;;  %8 = vst [vmem:[%s29_s1 + $0x8] sm:$0xff] %v4_v0 }

// kernel: tile.18
= control target key start
LH: loop header
LB: loop body
LE: loop exit
PB: predicated region body
PF: predicated region fallthrough
CT: control target
= control target key end

     0   :  { %s131_s10 = smov 120   ;;  %s132_s11 = smov 104   ;;  %vm3_vm0 = vcmask 64512   ;;  %vm9_vm1 = vcmask 1048512   ;;  %vm15_vm2 = vcmask 982912   ;;  %vm21_vm3 = vcmask 917312   ;;  %s207_s0 = inlined_call_operand.vmem [shape: f32[16,8], index: 0, kind: input, shape index: {}]   ;;  %s208_s1 = inlined_call_operand.vmem [shape: f32[1,128], index: 1, kind: output, shape index: {}]  }
   0x1   :  { %v101_v0 = vld [vmem:[%s207_s0 + $0xf] sm:$0x1]   ;;  %v103_v1 = vld [vmem:[%s207_s0 + $0xd] sm:$0x1]   ;;  %v102_v2 = vld [vmem:[%s207_s0 + $0xe] sm:$0x1]  }
   0x2   :  { %7 = vrot.lane.b32.xlu0 %v101_v0, %s131_s10  ;;  %19 = vrot.lane.b32.xlu1 %v103_v1, %s132_s11  ;;  %v104_v3 = vld [vmem:[%s207_s0 + $0xc] sm:$0x1]   ;;  %s133_s16 = smov 112   ;;  %s134_s17 = smov 96   ;;  %v105_v4 = vld [vmem:[%s207_s0 + $0xb] sm:$0x1]  }
   0x3   :  { %v106_v5 = vld [vmem:[%s207_s0 + $0xa] sm:$0x1]   ;;  %v2_v6 = vld [vmem:[%s207_s0] sm:$0x1]   ;;  %s135_s24 = smov 88   ;;  %s136_s25 = smov 80  }
   0x4   :  { %4 = vst.msk [vmem:[#allocation0] sm:$0x1] %vm3_vm0, %v2_v6   ;;  %v107_v7 = vld [vmem:[%s207_s0 + $0x9] sm:$0x1]   ;;  %v108_v8 = vld [vmem:[%s207_s0 + $0x8] sm:$0x1]  }
   0x5   :  { %s137_s30 = smov 72   ;;  %s138_s2 = smov 64   ;;  %v109_v9 = vld [vmem:[%s207_s0 + $0x7] sm:$0x1]   ;;  %v110_v10 = vld [vmem:[%s207_s0 + $0x6] sm:$0x1]  }
   0x6   :  { %13 = vrot.lane.b32.xlu0 %v102_v2, %s133_s16  ;;  %25 = vrot.lane.b32.xlu1 %v104_v3, %s134_s17  ;;  %s139_s7 = smov 56   ;;  %s140_s8 = smov 48   ;;  %v111_v11 = vld [vmem:[%s207_s0 + $0x5] sm:$0x1]   ;;  %v112_v12 = vld [vmem:[%s207_s0 + $0x4] sm:$0x1]  }
   0x7   :  { %s141_s13 = smov 40   ;;  %s142_s14 = smov 32   ;;  %v113_v13 = vld [vmem:[%s207_s0 + $0x3] sm:$0x1]   ;;  %v114_v14 = vld [vmem:[%s207_s0 + $0x2] sm:$0x1]  }
   0x8   :  { %s143_s19 = smov 24   ;;  %s144_s20 = smov 16   ;;  %v115_v15 = vld [vmem:[%s207_s0 + $0x1] sm:$0x1]   ;;  %vm27_vm4 = vcmask 851712   ;;  %vm33_vm5 = vcmask 786112  }
   0x9   :  { %s145_s0 = smov 8   ;;  %vm39_vm6 = vcmask 720512   ;;  %vm45_vm7 = vcmask 654912   ;;  %vm51_vm8 = vcmask 589312   ;;  %vm57_vm9 = vcmask 523712  }
   0xa   :  { %31 = vrot.lane.b32.xlu0 %v105_v4, %s135_s24  ;;  %37 = vrot.lane.b32.xlu1 %v106_v5, %s136_s25  ;;  %vm63_vm10 = vcmask 458112   ;;  %vm69_vm11 = vcmask 392512   ;;  %vm75_vm12 = vcmask 326912   ;;  %vm81_vm13 = vcmask 261312  }
   0xb   :  { %vm87_vm14 = vcmask 195712   ;;  %vm93_vm15 = vcmask 130112  }
   0xe   :  { %43 = vrot.lane.b32.xlu0 %v107_v7, %s137_s30  ;;  %49 = vrot.lane.b32.xlu1 %v108_v8, %s138_s2 }
  0x12   :  { %55 = vrot.lane.b32.xlu0 %v109_v9, %s139_s7  ;;  %61 = vrot.lane.b32.xlu1 %v110_v10, %s140_s8 }
  0x16   :  { %67 = vrot.lane.b32.xlu0 %v111_v11, %s141_s13  ;;  %73 = vrot.lane.b32.xlu1 %v112_v12, %s142_s14 }
  0x1a   :  { %79 = vrot.lane.b32.xlu0 %v113_v13, %s143_s19  ;;  %85 = vrot.lane.b32.xlu1 %v114_v14, %s144_s20 }
  0x1e   :  { %91 = vrot.lane.b32.xlu0 %v115_v15, %s145_s0 }
  0x74   :  { %v8_v16 = vpop.permute.xlu0 %7   ;;  %v20_v17 = vpop.permute.xlu1 %19  }
  0x75   :  { %10 = vst.msk [vmem:[#allocation0] sm:$0x1] %vm9_vm1, %v8_v16  }
  0x78   :  { %v14_v18 = vpop.permute.xlu0 %13   ;;  %v26_v19 = vpop.permute.xlu1 %25  }
  0x79   :  { %16 = vst.msk [vmem:[#allocation0] sm:$0x1] %vm15_vm2, %v14_v18  }
  0x7a   :  { %22 = vst.msk [vmem:[#allocation0] sm:$0x1] %vm21_vm3, %v20_v17  }
  0x7b   :  { %28 = vst.msk [vmem:[#allocation0] sm:$0x1] %vm27_vm4, %v26_v19  }
  0x7c   :  { %v32_v20 = vpop.permute.xlu0 %31   ;;  %v38_v21 = vpop.permute.xlu1 %37  }
  0x7d   :  { %34 = vst.msk [vmem:[#allocation0] sm:$0x1] %vm33_vm5, %v32_v20  }
  0x7e   :  { %40 = vst.msk [vmem:[#allocation0] sm:$0x1] %vm39_vm6, %v38_v21  }
  0x80   :  { %v44_v22 = vpop.permute.xlu0 %43   ;;  %v50_v23 = vpop.permute.xlu1 %49  }
  0x81   :  { %46 = vst.msk [vmem:[#allocation0] sm:$0x1] %vm45_vm7, %v44_v22  }
  0x82   :  { %52 = vst.msk [vmem:[#allocation0] sm:$0x1] %vm51_vm8, %v50_v23  }
  0x84   :  { %v56_v24 = vpop.permute.xlu0 %55   ;;  %v62_v25 = vpop.permute.xlu1 %61  }
  0x85   :  { %58 = vst.msk [vmem:[#allocation0] sm:$0x1] %vm57_vm9, %v56_v24  }
  0x86   :  { %64 = vst.msk [vmem:[#allocation0] sm:$0x1] %vm63_vm10, %v62_v25  }
  0x88   :  { %v68_v26 = vpop.permute.xlu0 %67   ;;  %v74_v27 = vpop.permute.xlu1 %73  }
  0x89   :  { %70 = vst.msk [vmem:[#allocation0] sm:$0x1] %vm69_vm11, %v68_v26  }
  0x8a   :  { %76 = vst.msk [vmem:[#allocation0] sm:$0x1] %vm75_vm12, %v74_v27  }
  0x8c   :  { %v80_v28 = vpop.permute.xlu0 %79   ;;  %v86_v29 = vpop.permute.xlu1 %85  }
  0x8d   :  { %82 = vst.msk [vmem:[#allocation0] sm:$0x1] %vm81_vm13, %v80_v28  }
  0x8e   :  { %88 = vst.msk [vmem:[#allocation0] sm:$0x1] %vm87_vm14, %v86_v29  }
  0x90   :  { %v92_v30 = vpop.permute.xlu0 %91  }
  0x91   :  { %94 = vst.msk [vmem:[#allocation0] sm:$0x1] %vm93_vm15, %v92_v30  }
  0x98   :  { %v98_v31 = vld [vmem:[#allocation0] sm:$0x1] }
  0x99   :  { %100 = vst [vmem:[%s208_s1] sm:$0x1] %v98_v31 }

// kernel: double_conv.1
= control target key start
LH: loop header
LB: loop body
LE: loop exit
PB: predicated region body
PF: predicated region fallthrough
CT: control target
= control target key end

     0   :  { %v922_v3 = vmov 0   ;;  %v24_v4 = vlaneseq  ;;  %s923_s25 = smov 64   ;;  %vm127_vm2 = vcmask 523264   ;;  %vm309_vm7 = vcmask 1040384   ;;  %s925_s21 = smov 16   ;;  %s1236_s0 = inlined_call_operand.vmem [shape: f32[32,64], index: 0, kind: input, shape index: {}]   ;;  %s1237_s1 = inlined_call_operand.vmem [shape: bf16[192,128], index: 1, kind: input, shape index: {}]   ;;  %s1238_s2 = inlined_call_operand.vmem [shape: bf16[384,128], index: 2, kind: input, shape index: {}]   ;;  %s1239_s3 = inlined_call_operand.vmem [shape: f32[2,128], index: 3, kind: input, shape index: {}]   ;;  %s1240_s4 = inlined_call_operand.vmem [shape: f32[32,128], index: 4, kind: output, shape index: {}]  }
   0x1   :  { %v20_v0 = vld [vmem:[%s1236_s0] sm:$0xff]  ;;  %v21_v1 = vld [vmem:[%s1236_s0 + $0x8] sm:$0xff]  ;;  %v22_v2 = vld [vmem:[%s1236_s0 + $0x10] sm:$0xff]  ;;  %238 = vmatprep.subr.bf16.mxu0 %v922_v3  ;;  %s926_s22 = smov 32   ;;  %vm927_vm9 = vmmov 1  }
   0x2   :  { %v872_v5 = vpack.i.bf16 %v21_v1, %v20_v0  ;;  %v23_v6 = vld [vmem:[%s1236_s0 + $0x18] sm:$0xff]  ;;  %v882_v7 = vld [vmem:[%s1237_s1] sm:$0xff]   ;;  %v99_v8 = vrot.slane %v21_v1, 1  ;;  %v883_v11 = vld [vmem:[%s1237_s1 + $0x8] sm:$0xff]   ;;  %v973_v12 = vshrl.u32 %v24_v4, 7  ;;  %v98_v13 = vrot.slane %v20_v0, 1 }
   0x3   :  { %v101_v9 = vrot.slane %v23_v6, 1  ;;  %v877_v10 = vpack.i.bf16 %v23_v6, %v22_v2  ;;  %239 = vmatpush1.bf16.msra.mxu0 %v882_v7  ;;  %v100_v14 = vrot.slane %v22_v2, 1  ;;  %v884_v16 = vld [vmem:[%s1237_s1 + $0x10] sm:$0xff]   ;;  %v82_v20 = vrot.slane %v21_v1, 7  ;;  %v885_v28 = vld [vmem:[%s1237_s1 + $0x18] sm:$0xff]   ;;  %v886_v35 = vld [vmem:[%s1237_s1 + $0x20] sm:$0xff]  }
   0x4   :  { %873 = vrot.lane.b32.xlu0 %v872_v5, %s923_s25  ;;  %240 = vmatprep.subr.bf16.mxu0 %v922_v3  ;;  %v26_v15 = vadd.s32 8, %v973_v12  ;;  %vm102_vm0 = vcmp.lt.s32.totalorder %v973_v12, 7  ;;  %v81_v21 = vrot.slane %v20_v0, 7  ;;  %v84_v24 = vrot.slane %v23_v6, 7  ;;  %v887_v39 = vld [vmem:[%s1237_s1 + $0x28] sm:$0xff]   ;;  %v888_v41 = vld [vmem:[%s1237_s1 + $0x30] sm:$0xff]  }
   0x5   :  { %v104_v18 = vsel %vm102_vm0, %v99_v8, %v100_v14  ;;  %v103_v19 = vsel %vm102_vm0, %v100_v14, %v101_v9  ;;  %v105_v22 = vsel %vm102_vm0, %v98_v13, %v99_v8  ;;  %v106_v23 = vsel %vm102_vm0, %v101_v9, %v98_v13  ;;  %v889_v42 = vld [vmem:[%s1237_s1 + $0x38] sm:$0xff]   ;;  %v890_v43 = vld [vmem:[%s1237_s1 + $0x40] sm:$0xff]   ;;  %v891_v44 = vld [vmem:[%s1237_s1 + $0x48] sm:$0xff]  }
   0x6   :  { %v40_v17 = vand.u32 15, %v26_v15  ;;  %v83_v26 = vrot.slane %v22_v2, 7  ;;  %vm85_vm3 = vcmp.lt.s32.totalorder %v973_v12, 1  ;;  %v28_v32 = vadd.s32 24, %v973_v12  ;;  %v892_v45 = vld [vmem:[%s1237_s1 + $0x50] sm:$0xff]   ;;  %v893_v46 = vld [vmem:[%s1237_s1 + $0x58] sm:$0xff]  }
   0x7   :  { %241 = vmatpush1.bf16.msra.mxu0 %v883_v11  ;;  %v88_v30 = vsel %vm85_vm3, %v81_v21, %v82_v20  ;;  %v89_v31 = vsel %vm85_vm3, %v84_v24, %v81_v21  ;;  %v33_v47 = vand.u32 15, %v973_v12  ;;  %v27_v48 = vadd.s32 16, %v973_v12  ;;  %s924_s1 = smov 8   ;;  %v914_v55 = vld [vmem:[%s1238_s2 + $0xa0] sm:$0xff]   ;;  %v915_v25 = vld [vmem:[%s1238_s2 + $0xa8] sm:$0xff]  }
   0x8   :  { %878 = vrot.lane.b32.xlu0 %v877_v10, %s923_s25  ;;  %242 = vmatprep.subr.bf16.mxu0 %v922_v3  ;;  %vm991_vm1 = vcmp.eq.s32.totalorder %v40_v17, 15  ;;  %v86_v33 = vsel %vm85_vm3, %v83_v26, %v84_v24  ;;  %v87_v34 = vsel %vm85_vm3, %v82_v20, %v83_v26  ;;  %v54_v36 = vand.u32 15, %v28_v32 }
   0x9   :  { %v108_v27 = vsel %vm991_vm1, 0.0, %v104_v18  ;;  %vm1052_vm5 = vcmp.eq.s32.totalorder %v33_v47, 0  ;;  %v47_v50 = vand.u32 15, %v27_v48  ;;  %v899_v47 = vld [vmem:[%s1238_s2 + $0x10] sm:$0xff]   ;;  %v900_v48 = vld [vmem:[%s1238_s2 + $0x58] sm:$0xff]   ;;  %vm800_vm12 = vmneg %vm991_vm1 }
   0xa   :  { %v133_v29 = vpack.c.bf16 %v108_v27, %v105_v22  ;;  %vm1016_vm4 = vcmp.eq.s32.totalorder %v54_v36, 15  ;;  %v90_v52 = vsel %vm1052_vm5, 0.0, %v89_v31  ;;  %vm792_vm8 = vmneg %vm1052_vm5 }
   0xb   :  { %243 = vmatpush1.bf16.msra.mxu0 %v884_v16  ;;  %v110_v38 = vsel %vm1016_vm4, 0.0, %v106_v23  ;;  %vm1058_vm6 = vcmp.eq.s32.totalorder %v47_v50, 0  ;;  %v901_v50 = vld [vmem:[%s1238_s2 + $0x18] sm:$0xff]   ;;  %vm793_vm10 = vmpackc.low %vm927_vm9, %vm792_vm8 }
   0xc   :  { %244 = vmatprep.subr.bf16.mxu0 %v922_v3  ;;  %766 = vmatprep.mubr.msk.bf16.mxu0 %vm127_vm2, %v133_v29  ;;  %v135_v40 = vpack.c.bf16 %v110_v38, %v103_v19  ;;  %v92_v60 = vsel %vm1058_vm6, 0.0, %v87_v34  ;;  %vm796_vm11 = vmneg %vm1058_vm6 }
   0xd   :  { %vm797_vm13 = vmpackc.low %vm927_vm9, %vm796_vm11 }
   0xe   :  { %vm801_vm14 = vmpackc.low %vm800_vm12, %vm927_vm9 }
   0xf   :  { %245 = vmatpush1.bf16.msra.mxu0 %v885_v28  ;;  %vm804_vm15 = vmneg %vm1016_vm4 }
  0x10   :  { %246 = vmatprep.subr.bf16.mxu0 %v922_v3 }
  0x13   :  { %247 = vmatpush1.bf16.msra.mxu0 %v886_v35 }
  0x14   :  { %248 = vmatprep.subr.bf16.mxu0 %v922_v3 }
  0x17   :  { %249 = vmatpush1.bf16.msra.mxu0 %v887_v39 }
  0x18   :  { %250 = vmatprep.subr.bf16.mxu0 %v922_v3 }
  0x1b   :  { %251 = vmatpush1.bf16.msra.mxu0 %v888_v41  ;;  %v895_v41 = vld [vmem:[%s1238_s2] sm:$0xff]  }
  0x1c   :  { %252 = vmatprep.subr.bf16.mxu0 %v922_v3 }
  0x1f   :  { %253 = vmatpush1.bf16.msra.mxu0 %v889_v42 }
  0x20   :  { %254 = vmatprep.subr.bf16.mxu0 %v922_v3 }
  0x23   :  { %255 = vmatpush1.bf16.msra.mxu0 %v890_v43 }
  0x24   :  { %256 = vmatprep.subr.bf16.mxu0 %v922_v3 }
  0x27   :  { %257 = vmatpush1.bf16.msra.mxu0 %v891_v44  ;;  %v896_v44 = vld [vmem:[%s1238_s2 + $0x48] sm:$0xff]  }
  0x28   :  { %258 = vmatprep.subr.bf16.mxu0 %v922_v3 }
  0x2b   :  { %259 = vmatpush1.bf16.msra.mxu0 %v892_v45  ;;  %v897_v45 = vld [vmem:[%s1238_s2 + $0x8] sm:$0xff]  }
  0x2c   :  { %260 = vmatprep.subr.bf16.mxu0 %v922_v3 }
  0x2f   :  { %261 = vmatpush1.bf16.msra.mxu0 %v893_v46  ;;  %v898_v46 = vld [vmem:[%s1238_s2 + $0x50] sm:$0xff]  }
  0x76   :  { %v874_v51 = vpop.permute.xlu0 %873 }
  0x77   :  { %v876_v53 = vunpack.i.h.bf16 %v874_v51  ;;  %v875_v54 = vunpack.i.l.bf16 %v874_v51  ;;  %v902_v51 = vld [vmem:[%s1238_s2 + $0x60] sm:$0xff]  }
  0x79   :  { %v128_v56 = vsel %vm127_vm2, %v90_v52, %v875_v54  ;;  %v129_v57 = vsel %vm127_vm2, %v88_v30, %v876_v53  ;;  %v903_v52 = vld [vmem:[%s1238_s2 + $0x20] sm:$0xff]   ;;  %v904_v53 = vld [vmem:[%s1238_s2 + $0x68] sm:$0xff]  }
  0x7a   :  { %v132_v58 = vpack.c.bf16 %v129_v57, %v128_v56  ;;  %v879_v59 = vpop.permute.xlu0 %878  ;;  %v905_v54 = vld [vmem:[%s1238_s2 + $0x28] sm:$0xff]   ;;  %v906_v56 = vld [vmem:[%s1238_s2 + $0x70] sm:$0xff]  }
  0x7b   :  { %v881_v61 = vunpack.i.h.bf16 %v879_v59  ;;  %v880_v62 = vunpack.i.l.bf16 %v879_v59  ;;  %v907_v57 = vld [vmem:[%s1238_s2 + $0x30] sm:$0xff]   ;;  %v909_v59 = vld [vmem:[%s1238_s2 + $0x38] sm:$0xff]  }
  0x7c   :  { %271 = vmatmul.mubr.bf16.vlgmr.msra.gmra.mrb[0].mxu0 %v132_v58  ;;  %v908_v58 = vld [vmem:[%s1238_s2 + $0x78] sm:$0xff]  }
  0x7d   :  { %767 = vmatprep.mubr.msk.bf16.mxu0 %vm127_vm2, %v135_v40  ;;  %v130_v63 = vsel %vm127_vm2, %v92_v60, %v880_v62  ;;  %v131_v0 = vsel %vm127_vm2, %v86_v33, %v881_v61  ;;  %v894_v40 = vld [vmem:[%s1238_s2 + $0x40] sm:$0xff]  }
  0x7e   :  { %v134_v1 = vpack.c.bf16 %v131_v0, %v130_v63  ;;  %808 = vmatprep.subr.bf16.mxu1 %v894_v40  ;;  %v910_v60 = vld [vmem:[%s1238_s2 + $0x80] sm:$0xff]  }
  0x7f   :  { %809 = vmatpush3.bf16.msra.mxu1 %v895_v41 }
  0x80   :  { %810 = vmatprep.subr.bf16.mxu1 %v896_v44 }
  0x83   :  { %811 = vmatpush3.bf16.msra.mxu1 %v897_v45 }
  0x84   :  { %279 = vmatmul.mubr.bf16.gmra.mrb[4].mxu0 %v134_v1  ;;  %812 = vmatprep.subr.bf16.mxu1 %v898_v46 }
  0x87   :  { %813 = vmatpush3.bf16.msra.mxu1 %v899_v47 }
  0x88   :  { %814 = vmatprep.subr.bf16.mxu1 %v900_v48 }
  0x8b   :  { %815 = vmatpush3.bf16.msra.mxu1 %v901_v50 }
  0x8c   :  { %816 = vmatprep.subr.bf16.mxu1 %v902_v51 }
  0x8f   :  { %817 = vmatpush3.bf16.msra.mxu1 %v903_v52  ;;  %v912_v52 = vld [vmem:[%s1238_s2 + $0x90] sm:$0xff]  }
  0x90   :  { %818 = vmatprep.subr.bf16.mxu1 %v904_v53  ;;  %v916_v53 = vld [vmem:[%s1238_s2 + $0xb0] sm:$0xff]  }
  0x93   :  { %819 = vmatpush3.bf16.msra.mxu1 %v905_v54  ;;  %v917_v54 = vld [vmem:[%s1238_s2 + $0xb8] sm:$0xff]  }
  0x94   :  { %820 = vmatprep.subr.bf16.mxu1 %v906_v56 }
  0x97   :  { %821 = vmatpush3.bf16.msra.mxu1 %v907_v57 }
  0x98   :  { %822 = vmatprep.subr.bf16.mxu1 %v908_v58 }
  0x9b   :  { %823 = vmatpush3.bf16.msra.mxu1 %v909_v59 }
  0x9c   :  { %846 = vmatprep.subr.bf16.mxu1 %v910_v60 }
 0x14f   :  { %v1069_v2 = vpop.f32.mrb[0].mxu0 }
 0x150   :  { %v274_v3 = vpop.f32.mrb[1].mxu0  ;;  %v296_v5 = vmul.f32 %v1069_v2, %v1069_v2 }
 0x151   :  { %v1071_v4 = vpop.f32.mrb[2].mxu0 }
 0x152   :  { %v287_v6 = vadd.f32 %v1071_v4, %v1069_v2  ;;  %v297_v7 = vmul.f32 %v1071_v4, %v1071_v4  ;;  %v277_v8 = vpop.f32.mrb[3].mxu0 }
 0x153   :  { %v1151_v8 = vsub.s32 0, %v973_v12  ;;  %v913_v12 = vld [vmem:[%s1238_s2 + $0x98] sm:$0xff]  }
 0x154   :  { %v300_v9 = vadd.f32 %v297_v7, %v296_v5  ;;  %v1148_v7 = vld [vmem:[%s1239_s3] sm:$0x1] }
 0x157   :  { %v1079_v10 = vpop.f32.mrb[4].mxu0 }
 0x158   :  { %v288_v11 = vadd.f32 %v287_v6, %v1079_v10  ;;  %v298_v13 = vmul.f32 %v1079_v10, %v1079_v10  ;;  %v282_v14 = vpop.f32.mrb[5].mxu0 }
 0x159   :  { %v1084_v15 = vpop.f32.mrb[6].mxu0 }
 0x15a   :  { %v301_v16 = vadd.f32 %v300_v9, %v298_v13  ;;  %v289_v17 = vadd.f32 %v288_v11, %v1084_v15  ;;  %v299_v18 = vmul.f32 %v1084_v15, %v1084_v15  ;;  %v285_v19 = vpop.f32.mrb[7].mxu0  ;;  %v1157_v13 = vld [vmem:[%s1239_s3 + $0x1] sm:$0x1] }
 0x15c   :  { %v290_v20 = vrot.slane %v289_v17, 4  ;;  %v302_v21 = vadd.f32 %v301_v16, %v299_v18 }
 0x15e   :  { %v291_v22 = vadd.f32 %v290_v20, %v289_v17  ;;  %v303_v23 = vrot.slane %v302_v21, 4 }
 0x160   :  { %v292_v24 = vrot.slane %v291_v22, 2  ;;  %v304_v26 = vadd.f32 %v303_v23, %v302_v21 }
 0x162   :  { %v293_v27 = vadd.f32 %v292_v24, %v291_v22  ;;  %v305_v28 = vrot.slane %v304_v26, 2 }
 0x164   :  { %v294_v29 = vrot.slane %v293_v27, 1  ;;  %v306_v30 = vadd.f32 %v305_v28, %v304_v26 }
 0x166   :  { %v307_v31 = vrot.slane %v306_v30, 1  ;;  %v295_v32 = vadd.f32 %v294_v29, %v293_v27 }
 0x168   :  { %v308_v33 = vadd.f32 %v307_v31, %v306_v30 }
 0x16a   :  { %v310_v34 = vsel %vm309_vm7, %v295_v32, %v308_v33 }
 0x16b   :  { %311 = vrot.lane.b32.xlu1 %v310_v34, %s924_s1 }
 0x1dd   :  { %v312_v35 = vpop.permute.xlu1 %311 }
 0x1de   :  { %v313_v36 = vadd.f32 %v312_v35, %v310_v34 }
 0x1e0   :  { %314 = vrot.lane.b32.xlu1 %v313_v36, %s925_s21 }
 0x252   :  { %v315_v38 = vpop.permute.xlu1 %314 }
 0x253   :  { %v316_v39 = vadd.f32 %v315_v38, %v313_v36 }
 0x255   :  { %317 = vrot.lane.b32.xlu0 %v316_v39, %s926_s22 }
 0x2c7   :  { %v318_v42 = vpop.permute.xlu0 %317 }
 0x2c8   :  { %v319_v43 = vadd.f32 %v318_v42, %v316_v39 }
 0x2ca   :  { %320 = vrot.lane.b32.xlu1 %v319_v43, %s923_s25 }
 0x33c   :  { %v321_v61 = vpop.permute.xlu1 %320 }
 0x33d   :  { %v322_v62 = vadd.f32 %v321_v61, %v319_v43  ;;  %v911_v43 = vld [vmem:[%s1238_s2 + $0x88] sm:$0xff]  }
 0x33f   :  { %v323_v63 = vmul.f32 0.001953125, %v322_v62 }
 0x341   :  { %v324_v0 = vmul.f32 %v323_v63, %v323_v63 }
 0x343   :  { %v326_v1 = vrot.slane %v324_v0, 7 }
 0x345   :  { %v328_v3 = vsub.f32 %v323_v63, %v326_v1 }
 0x347   :  { %v329_v5 = vadd.f32 1e-05, %v328_v3 }
 0x349   :  { %918 = vrsqrt.f32 %v329_v5 }
 0x353   :  { %v919_v6 = vpop.eup %918 }
 0x354   :  { %v332_v9 = vrot.slane %v919_v6, 1 }
 0x356   :  { %v334_v11 = vmul.f32 %v332_v9, %v1148_v7 }
 0x358   :  { %v335_v14 = vmul.f32 %v334_v11, %v323_v63  ;;  %v340_v16 = vrot.slane %v334_v11, %v1151_v8 }
 0x35a   :  { %v336_v17 = vsub.f32 %v1157_v13, %v335_v14  ;;  %v344_v18 = vmul.f32 %v340_v16, %v1084_v15  ;;  %v341_v20 = vmul.f32 %v340_v16, %v1069_v2  ;;  %v342_v21 = vmul.f32 %v340_v16, %v1071_v4 }
 0x35b   :  { %v343_v22 = vmul.f32 %v340_v16, %v1079_v10 }
 0x35c   :  { %v348_v19 = vrot.slane %v336_v17, %v1151_v8 }
 0x35e   :  { %v352_v23 = vadd.f32 %v348_v19, %v344_v18  ;;  %v349_v24 = vadd.f32 %v348_v19, %v341_v20  ;;  %v350_v26 = vadd.f32 %v348_v19, %v342_v21  ;;  %v351_v27 = vadd.f32 %v348_v19, %v343_v22 }
 0x360   :  { %v356_v28 = vmax.f32 %v352_v23, 0.0  ;;  %v353_v29 = vmax.f32 %v349_v24, 0.0  ;;  %v354_v30 = vmax.f32 %v350_v26, 0.0  ;;  %v355_v31 = vmax.f32 %v351_v27, 0.0 }
 0x362   :  { %v357_v32 = vrot.slane %v353_v29, 7  ;;  %v358_v33 = vrot.slane %v354_v30, 7  ;;  %v369_v34 = vrot.slane %v353_v29, 1  ;;  %v370_v15 = vrot.slane %v354_v30, 1 }
 0x363   :  { %v372_v2 = vrot.slane %v356_v28, 1  ;;  %v382_v35 = vpack.c.bf16 %v354_v30, %v353_v29  ;;  %v360_v4 = vrot.slane %v356_v28, 7  ;;  %v385_v36 = vpack.c.bf16 %v356_v28, %v355_v31 }
 0x364   :  { %v363_v10 = vsel %vm85_vm3, %v357_v32, %v358_v33  ;;  %v359_v38 = vrot.slane %v355_v31, 7  ;;  %v371_v39 = vrot.slane %v355_v31, 1  ;;  %v375_v40 = vsel %vm102_vm0, %v369_v34, %v370_v15 }
 0x365   :  { %v376_v41 = vsel %vm102_vm0, %v372_v2, %v369_v34  ;;  %611 = vmatprep.mubr.bf16.mxu1 %v382_v35  ;;  %v364_v49 = vsel %vm85_vm3, %v360_v4, %v357_v32 }
 0x366   :  { %v794_v42 = vpack.c.bf16 %v363_v10, %v364_v49  ;;  %v361_v44 = vsel %vm85_vm3, %v359_v38, %v360_v4  ;;  %v362_v45 = vsel %vm85_vm3, %v358_v33, %v359_v38  ;;  %v373_v46 = vsel %vm102_vm0, %v371_v39, %v372_v2 }
 0x367   :  { %v798_v47 = vpack.c.bf16 %v361_v44, %v362_v45  ;;  %v374_v48 = vsel %vm102_vm0, %v370_v15, %v371_v39  ;;  %v806_v50 = vpack.c.bf16 %v376_v41, %v373_v46  ;;  %vm805_vm0 = vmpackc.low %vm804_vm15, %vm927_vm9 }
 0x368   :  { %795 = vmatmul.mubr.msk.bf16.vlgmr.msra.gmra.mrb[0].mxu1 %vm793_vm10, %v794_v42  ;;  %v802_v51 = vpack.c.bf16 %v374_v48, %v375_v40 }
 0x369   :  { %847 = vmatpush3.bf16.msra.mxu1 %v910_v60  ;;  %619 = vmatprep.mubr.bf16.mxu1 %v385_v36 }
 0x36a   :  { %848 = vmatprep.subr.bf16.mxu1 %v911_v43 }
 0x36d   :  { %849 = vmatpush3.bf16.msra.mxu1 %v911_v43 }
 0x36e   :  { %850 = vmatprep.subr.bf16.mxu1 %v912_v52 }
 0x370   :  { %799 = vmatmul.mubr.msk.bf16.gmra.mrb[4].mxu1 %vm797_vm13, %v798_v47 }
 0x371   :  { %851 = vmatpush3.bf16.msra.mxu1 %v912_v52  ;;  %862 = vmatprep.mubr.msk.bf16.mxu1 %vm801_vm14, %v802_v51 }
 0x372   :  { %852 = vmatprep.subr.bf16.mxu1 %v913_v12 }
 0x375   :  { %853 = vmatpush3.bf16.msra.mxu1 %v913_v12 }
 0x376   :  { %854 = vmatprep.subr.bf16.mxu1 %v914_v55 }
 0x379   :  { %855 = vmatpush3.bf16.msra.mxu1 %v914_v55 }
 0x37a   :  { %856 = vmatprep.subr.bf16.mxu1 %v915_v25 }
 0x37d   :  { %857 = vmatpush3.bf16.msra.mxu1 %v915_v25 }
 0x37e   :  { %858 = vmatprep.subr.bf16.mxu1 %v916_v53 }
 0x381   :  { %859 = vmatpush3.bf16.msra.mxu1 %v916_v53 }
 0x382   :  { %860 = vmatprep.subr.bf16.mxu1 %v917_v54 }
 0x385   :  { %861 = vmatpush3.bf16.msra.mxu1 %v917_v54 }
 0x388   :  { %863 = vmatmul.mubr.msk.bf16.vlgmr.msra.gmra.mrb[8].mxu1 %vm805_vm0, %v806_v50 }
 0x43b   :  { %v824_v56 = vpop.f32.mrb[0].mxu1 }
 0x43c   :  { %v825_v57 = vpop.f32.mrb[1].mxu1 }
 0x43d   :  { %v826_v58 = vadd.f32 %v825_v57, %v824_v56  ;;  %v827_v59 = vpop.f32.mrb[2].mxu1 }
 0x43e   :  { %v828_v60 = vpop.f32.mrb[3].mxu1 }
 0x43f   :  { %v829_v61 = vadd.f32 %v828_v60, %v827_v59 }
 0x443   :  { %v830_v62 = vpop.f32.mrb[4].mxu1 }
 0x444   :  { %v831_v63 = vpop.f32.mrb[5].mxu1 }
 0x445   :  { %v832_v0 = vadd.f32 %v831_v63, %v830_v62  ;;  %v833_v1 = vpop.f32.mrb[6].mxu1 }
 0x446   :  { %v834_v3 = vpop.f32.mrb[7].mxu1 }
 0x447   :  { %v835_v5 = vadd.f32 %v834_v3, %v833_v1 }
 0x45b   :  { %v864_v6 = vpop.f32.mrb[8].mxu1 }
 0x45c   :  { %v671_v9 = vadd.f32 %v864_v6, %v832_v0  ;;  %v662_v37 = vpop.f32.mrb[9].mxu1 }
 0x45d   :  { %v663_v11 = vadd.f32 %v826_v58, %v662_v37  ;;  %v865_v14 = vpop.f32.mrb[10].mxu1 }
 0x45e   :  { %v674_v16 = vadd.f32 %v865_v14, %v835_v5  ;;  %v665_v17 = vpop.f32.mrb[11].mxu1  ;;  %v688_v22 = vmul.f32 %v671_v9, %v671_v9 }
 0x45f   :  { %v666_v18 = vadd.f32 %v829_v61, %v665_v17  ;;  %v686_v19 = vmul.f32 %v663_v11, %v663_v11 }
 0x460   :  { %v689_v26 = vmul.f32 %v674_v16, %v674_v16 }
 0x461   :  { %v677_v20 = vadd.f32 %v666_v18, %v663_v11  ;;  %v687_v21 = vmul.f32 %v666_v18, %v666_v18 }
 0x463   :  { %v678_v23 = vadd.f32 %v677_v20, %v671_v9  ;;  %v690_v24 = vadd.f32 %v687_v21, %v686_v19 }
 0x465   :  { %v679_v27 = vadd.f32 %v678_v23, %v674_v16  ;;  %v691_v28 = vadd.f32 %v690_v24, %v688_v22 }
 0x467   :  { %v680_v29 = vrot.slane %v679_v27, 4  ;;  %v692_v30 = vadd.f32 %v691_v28, %v689_v26 }
 0x469   :  { %v681_v31 = vadd.f32 %v680_v29, %v679_v27  ;;  %v693_v32 = vrot.slane %v692_v30, 4 }
 0x46b   :  { %v682_v33 = vrot.slane %v681_v31, 2  ;;  %v694_v34 = vadd.f32 %v693_v32, %v692_v30 }
 0x46d   :  { %v683_v15 = vadd.f32 %v682_v33, %v681_v31  ;;  %v695_v2 = vrot.slane %v694_v34, 2 }
 0x46f   :  { %v684_v35 = vrot.slane %v683_v15, 1  ;;  %v696_v4 = vadd.f32 %v695_v2, %v694_v34 }
 0x471   :  { %v697_v36 = vrot.slane %v696_v4, 1  ;;  %v685_v10 = vadd.f32 %v684_v35, %v683_v15 }
 0x473   :  { %v698_v38 = vadd.f32 %v697_v36, %v696_v4 }
 0x475   :  { %v699_v39 = vsel %vm309_vm7, %v685_v10, %v698_v38 }
 0x476   :  { %700 = vrot.lane.b32.xlu0 %v699_v39, %s924_s1 }
 0x4e8   :  { %v701_v40 = vpop.permute.xlu0 %700 }
 0x4e9   :  { %v702_v41 = vadd.f32 %v701_v40, %v699_v39 }
 0x4eb   :  { %703 = vrot.lane.b32.xlu1 %v702_v41, %s925_s21 }
 0x55d   :  { %v704_v49 = vpop.permute.xlu1 %703 }
 0x55e   :  { %v705_v42 = vadd.f32 %v704_v49, %v702_v41 }
 0x560   :  { %706 = vrot.lane.b32.xlu0 %v705_v42, %s926_s22 }
 0x5d2   :  { %v707_v43 = vpop.permute.xlu0 %706 }
 0x5d3   :  { %v708_v44 = vadd.f32 %v707_v43, %v705_v42 }
 0x5d5   :  { %709 = vrot.lane.b32.xlu1 %v708_v44, %s923_s25 }
 0x647   :  { %v710_v45 = vpop.permute.xlu1 %709 }
 0x648   :  { %v711_v46 = vadd.f32 %v710_v45, %v708_v44 }
 0x64a   :  { %v712_v47 = vmul.f32 0.001953125, %v711_v46 }
 0x64c   :  { %v713_v48 = vmul.f32 %v712_v47, %v712_v47 }
 0x64e   :  { %v715_v50 = vrot.slane %v713_v48, 7 }
 0x650   :  { %v717_v51 = vsub.f32 %v712_v47, %v715_v50 }
 0x652   :  { %v718_v52 = vadd.f32 1e-05, %v717_v51 }
 0x654   :  { %920 = vrsqrt.f32 %v718_v52 }
 0x65e   :  { %v921_v12 = vpop.eup %920 }
 0x65f   :  { %v721_v55 = vrot.slane %v921_v12, 1 }
 0x661   :  { %v723_v25 = vmul.f32 %v721_v55, %v1148_v7 }
 0x663   :  { %v724_v53 = vmul.f32 %v723_v25, %v712_v47  ;;  %v729_v54 = vrot.slane %v723_v25, %v1151_v8 }
 0x665   :  { %v725_v56 = vsub.f32 %v1157_v13, %v724_v53  ;;  %v730_v57 = vmul.f32 %v729_v54, %v663_v11  ;;  %v731_v58 = vmul.f32 %v729_v54, %v666_v18  ;;  %v732_v59 = vmul.f32 %v729_v54, %v671_v9 }
 0x666   :  { %v733_v60 = vmul.f32 %v729_v54, %v674_v16 }
 0x667   :  { %v737_v61 = vrot.slane %v725_v56, %v1151_v8 }
 0x669   :  { %v738_v62 = vadd.f32 %v737_v61, %v730_v57  ;;  %v739_v63 = vadd.f32 %v737_v61, %v731_v58  ;;  %v740_v0 = vadd.f32 %v737_v61, %v732_v59  ;;  %v741_v1 = vadd.f32 %v737_v61, %v733_v60 }
 0x66b   :  { %v742_v3 = vmax.f32 %v738_v62, 0.0  ;;  %v743_v5 = vmax.f32 %v739_v63, 0.0  ;;  %v744_v6 = vmax.f32 %v740_v0, 0.0  ;;  %v745_v37 = vmax.f32 %v741_v1, 0.0 }
 0x66d   :  { %746 = vst [vmem:[%s1240_s4] sm:$0xff] %v742_v3  ;;  %747 = vst [vmem:[%s1240_s4 + $0x8] sm:$0xff] %v743_v5 }
 0x66e   :  { %748 = vst [vmem:[%s1240_s4 + $0x10] sm:$0xff] %v744_v6  ;;  %749 = vst [vmem:[%s1240_s4 + $0x18] sm:$0xff] %v745_v37 }

</bundles_post_ra>
